<compile_context>
chip_gen: v7x
topology: tpu7x:2x2x1
jax: 0.10.0
libtpu: 0.0.40
codegen_flags: <defaults>
</compile_context>

<pallas_src>
import functools

import jax
import jax.numpy as jnp
from jax.experimental import pallas as pl
from jax.experimental.pallas import tpu as pltpu


def _xent_fullv_kernel(logits_ref, tgt_ref, out_ref):
    """Full-vocab-resident row tile; two traversals of the (tm, V) block."""
    x = logits_ref[...]                                        # (tm, V) native dtype
    m = jnp.max(x, axis=-1, keepdims=True)                     # pass 1 (native dtype)
    xm = (x - m).astype(jnp.float32)                           # single upcast
    tgt = tgt_ref[...]                                         # (tm, 1) int32, -1 = masked
    col = jax.lax.broadcasted_iota(jnp.int32, xm.shape, 1)     # (tm, V)
    # pass 2: both reductions share the same xm traversal
    sum_exp = jnp.sum(jnp.exp(xm), axis=-1, keepdims=True)     # (tm, 1)
    picked_m = jnp.sum(jnp.where(col == tgt, xm, 0.0),
                       axis=-1, keepdims=True)                 # xm[tgt] == x[tgt] - m
    # loss = logsumexp(x) - x[tgt] = log(sum_exp) - picked_m ; masked rows -> 0
    loss = jnp.where(tgt >= 0, jnp.log(sum_exp) - picked_m, 0.0)
    # lane-dense per-tile partial sum; wrapper reads [:, 0, 0] and reduces.
    out_ref[...] = jnp.broadcast_to(jnp.sum(loss), out_ref.shape)


def _xent_tiledv_kernel(logits_ref, tgt_ref, out_ref, m_sc, s_sc, p_sc, *, V, tv):
    """V-tiled online-logsumexp variant for large vocabularies."""
    j = pl.program_id(1)

    @pl.when(j == 0)
    def _():
        m_sc[...] = jnp.full_like(m_sc, -jnp.inf)
        s_sc[...] = jnp.zeros_like(s_sc)
        p_sc[...] = jnp.zeros_like(p_sc)

    x = logits_ref[...].astype(jnp.float32)                    # (tm, tv)
    col = jax.lax.broadcasted_iota(jnp.int32, x.shape, 1) + j * tv
    x = jnp.where(col < V, x, -jnp.inf)                        # mask ragged V columns
    tgt = tgt_ref[...]                                         # (tm, 1)

    m_new = jnp.maximum(m_sc[...], jnp.max(x, axis=-1, keepdims=True))
    s_sc[...] = (s_sc[...] * jnp.exp(m_sc[...] - m_new)
                 + jnp.sum(jnp.exp(x - m_new), axis=-1, keepdims=True))
    p_sc[...] = p_sc[...] + jnp.sum(jnp.where(col == tgt, x, 0.0),
                                    axis=-1, keepdims=True)    # raw x[tgt]
    m_sc[...] = m_new

    @pl.when(j == pl.num_programs(1) - 1)
    def _():
        loss = jnp.where(tgt >= 0, m_sc[...] + jnp.log(s_sc[...]) - p_sc[...], 0.0)
        out_ref[...] = jnp.broadcast_to(jnp.sum(loss), out_ref.shape)


def masked_cross_entropy_loss(logits, target, length, *, tm=None, tv=None,
                              vmem_limit_bytes=None):
    """logits: (B, T, V) float; target: (B, T) int; length: (B,) int."""
    B, T, V = logits.shape
    N = B * T
    itemsize = jnp.dtype(logits.dtype).itemsize

    # ---- generation-aware VMEM budgeting -------------------------------
    try:
        vmem_cap = pltpu.get_tpu_info().vmem_capacity_bytes
    except Exception:
        vmem_cap = 64 * 1024 * 1024            # v7x-safe fallback
    if vmem_limit_bytes is None:
        vmem_limit_bytes = min(vmem_cap // 2, 64 * 1024 * 1024)
    tile_budget = min(vmem_cap // 4, 16 * 1024 * 1024)

    # Tile V only for LLM-scale vocabularies (full-V residency otherwise).
    use_tiled_v = tv is not None or V >= 16 * 1024
    if use_tiled_v:
        if tv is None:
            tv = 2048
        tv = max(128, (tv // 128) * 128)       # lane-aligned V tile
        v_block = tv
        n_v_tiles = -(-V // tv)
    else:
        v_block = V
        n_v_tiles = 1

    # Per-row VMEM cost: double-buffered input block (2*itemsize/elem) plus the
    # f32 working copy and exp / iota-compare temporaries (~3 f32 blocks), plus
    # the lane-padded (tm, 1) int32 target double buffer (~1 KiB / row).
    per_row_bytes = v_block * (2 * itemsize + 12) + 1024
    if tm is None:
        tm = tile_budget // per_row_bytes
        tm = max(16, min(1024, (tm // 16) * 16))
        # Keep >= ~8 row tiles so megacore sharding / pipelining has work.
        if N >= 8 * 16:
            tm = min(tm, max(16, ((N // 8) // 16) * 16))
    tm = max(16, (tm // 16) * 16)              # multiple of 16 (f32 and bf16 ok)
    tm = min(tm, max(16, ((N + 15) // 16) * 16))

    n_tiles = -(-N // tm)                      # ceil
    N_pad = n_tiles * tm

    # Logits stay UNPADDED (no full HBM copy).  The ragged last row tile is
    # handled by tgt = -1 masking.  Only the tiny target column is padded.
    logits_flat = logits.reshape(N, V)

    t_idx = jnp.arange(T, dtype=jnp.int32)[None, :]
    valid = t_idx < length.astype(jnp.int32)[:, None]          # (B, T)
    tgt = jnp.where(valid, target.astype(jnp.int32), -1).reshape(N, 1)
    if N_pad != N:
        tgt = jnp.pad(tgt, ((0, N_pad - N), (0, 0)), constant_values=-1)

    out_shape = jax.ShapeDtypeStruct((n_tiles, 8, 128), jnp.float32)

    if not use_tiled_v:
        partials = pl.pallas_call(
            _xent_fullv_kernel,
            out_shape=out_shape,
            grid=(n_tiles,),
            in_specs=[
                pl.BlockSpec((tm, V), lambda i: (i, 0)),   # logits rows, full V
                pl.BlockSpec((tm, 1), lambda i: (i, 0)),   # masked targets
            ],
            out_specs=pl.BlockSpec((1, 8, 128), lambda i: (i, 0, 0)),
            compiler_params=pltpu.CompilerParams(
                dimension_semantics=("parallel",),
                vmem_limit_bytes=vmem_limit_bytes),
        )(logits_flat, tgt)
    else:
        kernel = functools.partial(_xent_tiledv_kernel, V=V, tv=tv)
        partials = pl.pallas_call(
            kernel,
            out_shape=out_shape,
            grid=(n_tiles, n_v_tiles),                     # V axis last, arbitrary
            in_specs=[
                pl.BlockSpec((tm, tv), lambda i, j: (i, j)),
                pl.BlockSpec((tm, 1), lambda i, j: (i, 0)),
            ],
            out_specs=pl.BlockSpec((1, 8, 128), lambda i, j: (i, 0, 0)),
            scratch_shapes=[pltpu.VMEM((tm, 1), jnp.float32)] * 3,
            compiler_params=pltpu.CompilerParams(
                dimension_semantics=("parallel", "arbitrary"),
                vmem_limit_bytes=vmem_limit_bytes),
        )(logits_flat, tgt)

    total = jnp.sum(partials[:, 0, 0])
    # Matches the PyTorch module exactly: sum(masked losses) / sum(length).
    return total / jnp.sum(length.astype(jnp.float32))


def _reference(logits, target, length):
    B, T, V = logits.shape
    logp = jax.nn.log_softmax(logits.reshape(-1, V).astype(jnp.float32), axis=-1)
    nll = -jnp.take_along_axis(logp, target.reshape(-1, 1), axis=1).reshape(B, T)
    mask = (jnp.arange(T)[None, :] < length[:, None]).astype(jnp.float32)
    return jnp.sum(nll * mask) / jnp.sum(length.astype(jnp.float32))


if __name__ == "__main__":
    key = jax.random.PRNGKey(0)
    k1, k2, k3, k4, k5, k6 = jax.random.split(key, 6)

    # Primary case: batch=2, seq=8, vocab=32 (full-V path).
    B, T, V = 2, 8, 32
    logits = jax.random.normal(k1, (B, T, V), dtype=jnp.float32)
    target = jax.random.randint(k2, (B, T), 0, V, dtype=jnp.int32)
    length = jnp.array([5, 8], dtype=jnp.int32)
    loss = jax.block_until_ready(masked_cross_entropy_loss(logits, target, length))
    ref = _reference(logits, target, length)
    assert jnp.allclose(loss, ref, rtol=1e-5, atol=1e-5), (loss, ref)

    # Ragged-row case (N % tm != 0): logits are NOT padded; overhanging rows of
    # the last tile are masked via tgt = -1.
    B2, T2, V2 = 3, 7, 32
    logits2 = jax.random.normal(k3, (B2, T2, V2), dtype=jnp.float32)
    target2 = jax.random.randint(k4, (B2, T2), 0, V2, dtype=jnp.int32)
    length2 = jnp.array([7, 3, 5], dtype=jnp.int32)
    loss2 = jax.block_until_ready(
        masked_cross_entropy_loss(logits2, target2, length2, tm=16))
    ref2 = _reference(logits2, target2, length2)
    assert jnp.allclose(loss2, ref2, rtol=1e-5, atol=1e-5), (loss2, ref2)

    # V-tiled online-logsumexp path (forced small tv to exercise it).
    B3, T3, V3 = 2, 8, 384
    logits3 = jax.random.normal(k5, (B3, T3, V3), dtype=jnp.float32)
    target3 = jax.random.randint(k6, (B3, T3), 0, V3, dtype=jnp.int32)
    length3 = jnp.array([8, 4], dtype=jnp.int32)
    loss3 = jax.block_until_ready(
        masked_cross_entropy_loss(logits3, target3, length3, tv=128))
    ref3 = _reference(logits3, target3, length3)
    assert jnp.allclose(loss3, ref3, rtol=1e-5, atol=1e-5), (loss3, ref3)

    print("KERNEL_OK")
</pallas_src>

<mosaic_0001>
module attributes {stable_mosaic.version = 11 : i64} {
  func.func @_xent_fullv_kernel(%arg0: i32, %arg1: memref<16x32xf32, #tpu.memory_space<vmem>>, %arg2: memref<16x1xi32, #tpu.memory_space<vmem>>, %arg3: memref<1x8x128xf32, #tpu.memory_space<vmem>>) attributes {dimension_semantics = [#tpu.dimension_semantics<parallel>], iteration_bounds = array<i64: 1>, scalar_prefetch = 0 : i64, scratch_operands = 0 : i64, tpu.core_type = #tpu.core_type<tc>, window_params = [{transform_indices = @transform_0, window_bounds = array<i64: 16, 32>}, {transform_indices = @transform_1, window_bounds = array<i64: 16, 1>}, {transform_indices = @transform_2, window_bounds = array<i64: 1, 8, 128>}]} {
    %c0 = arith.constant 0 : index
    %c0_0 = arith.constant 0 : index
    %0 = vector.load %arg1[%c0, %c0_0] : memref<16x32xf32, #tpu.memory_space<vmem>>, vector<16x32xf32>
    %cst = arith.constant dense<0xFF800000> : vector<16xf32>
    %1 = vector.multi_reduction <maximumf>, %0, %cst [1] : vector<16x32xf32> to vector<16xf32>
    %2 = vector.shape_cast %1 : vector<16xf32> to vector<16x1xf32>
    %3 = vector.broadcast %2 : vector<16x1xf32> to vector<16x32xf32>
    %4 = arith.subf %0, %3 : vector<16x32xf32>
    %c0_1 = arith.constant 0 : index
    %c0_2 = arith.constant 0 : index
    %5 = vector.load %arg2[%c0_1, %c0_2] : memref<16x1xi32, #tpu.memory_space<vmem>>, vector<16x1xi32>
    %6 = tpu.iota {dimensions = array<i32: 1>} : vector<16x32xi32>
    %7 = math.exp %4 : vector<16x32xf32>
    %cst_3 = arith.constant dense<0.000000e+00> : vector<16xf32>
    %8 = vector.multi_reduction <add>, %7, %cst_3 [1] : vector<16x32xf32> to vector<16xf32>
    %9 = vector.shape_cast %8 : vector<16xf32> to vector<16x1xf32>
    %10 = vector.broadcast %5 : vector<16x1xi32> to vector<16x32xi32>
    %11 = arith.cmpi eq, %6, %10 : vector<16x32xi32>
    %cst_4 = arith.constant 0.000000e+00 : f32
    %12 = vector.broadcast %cst_4 : f32 to vector<16x32xf32>
    %13 = arith.select %11, %4, %12 : vector<16x32xi1>, vector<16x32xf32>
    %cst_5 = arith.constant dense<0.000000e+00> : vector<16xf32>
    %14 = vector.multi_reduction <add>, %13, %cst_5 [1] : vector<16x32xf32> to vector<16xf32>
    %15 = vector.shape_cast %14 : vector<16xf32> to vector<16x1xf32>
    %c0_i32 = arith.constant 0 : i32
    %16 = vector.broadcast %c0_i32 : i32 to vector<16x1xi32>
    %17 = arith.cmpi sge, %5, %16 : vector<16x1xi32>
    %18 = math.log %9 : vector<16x1xf32>
    %19 = arith.subf %18, %15 : vector<16x1xf32>
    %cst_6 = arith.constant 0.000000e+00 : f32
    %20 = vector.broadcast %cst_6 : f32 to vector<16x1xf32>
    %21 = arith.select %17, %19, %20 : vector<16x1xi1>, vector<16x1xf32>
    %22 = vector.shape_cast %21 : vector<16x1xf32> to vector<1x16x1xf32>
    %cst_7 = arith.constant dense<0.000000e+00> : vector<1xf32>
    %23 = vector.multi_reduction <add>, %22, %cst_7 [1, 2] : vector<1x16x1xf32> to vector<1xf32>
    %24 = vector.shape_cast %23 : vector<1xf32> to vector<1x1x1xf32>
    %25 = vector.extract %24[0, 0, 0] : f32 from vector<1x1x1xf32>
    %26 = vector.broadcast %25 : f32 to vector<1x8x128xf32>
    %c0_8 = arith.constant 0 : index
    %c0_9 = arith.constant 0 : index
    %c0_10 = arith.constant 0 : index
    %27 = vector.load %arg3[%c0_8, %c0_9, %c0_10] : memref<1x8x128xf32, #tpu.memory_space<vmem>>, vector<1x8x128xf32>
    tpu.vector_store %arg3[%c0_8, %c0_9, %c0_10], %26 {strides = array<i32>} : memref<1x8x128xf32, #tpu.memory_space<vmem>>, vector<1x8x128xf32>,
    return
  }
  func.func @transform_0(%arg0: i32) -> (i32, i32) {
    %c0_i32 = arith.constant 0 : i32
    %c0_i32_0 = arith.constant 0 : i32
    return %arg0, %c0_i32 : i32, i32
  }
  func.func @transform_1(%arg0: i32) -> (i32, i32) {
    %c0_i32 = arith.constant 0 : i32
    %c0_i32_0 = arith.constant 0 : i32
    return %arg0, %c0_i32 : i32, i32
  }
  func.func @transform_2(%arg0: i32) -> (i32, i32, i32) {
    %c0_i32 = arith.constant 0 : i32
    %c0_i32_0 = arith.constant 0 : i32
    %c0_i32_1 = arith.constant 0 : i32
    return %arg0, %c0_i32, %c0_i32_0 : i32, i32, i32
  }
}

</mosaic_0001>

<bundles_post_ra>
// kernel: tpu_custom_call.1
= control target key start
LH: loop header
LB: loop body
LE: loop exit
PB: predicated region body
PF: predicated region fallthrough
CT: control target
= control target key end

     0   :  { %vm14_vm0 = vcmask 261120   ;;  %v130_v4 = vmov 0   ;;  %s177_s0 = inlined_call_operand.vmem [shape: f32[16,32], index: 0, kind: input, shape index: {}]   ;;  %s178_s1 = inlined_call_operand.vmem [shape: s32[16,1], index: 1, kind: input, shape index: {}]   ;;  %s179_s2 = inlined_call_operand.hbm [shape: f32[1,8,128], index: 2, kind: output, shape index: {}]  }
   0x1   :  { %v12_v0 = vld [vmem:[%s177_s0] sm:$0xff]  ;;  %v13_v1 = vld [vmem:[%s177_s0 + $0x8] sm:$0xff]  ;;  %96 = vset.pattern.permute.xlu1 %v130_v4  ;;  %97 = vset.pattern.permute.xlu0 %v130_v4 }
   0x2   :  { %v23_v2 = vld [vmem:[%s178_s1] sm:$0xff]  ;;  %v15_v3 = vsel %vm14_vm0, %v12_v0, -inf }
   0x3   :  { %7 = vsyncpa [#allocation3], 0  ;;  %16 = vmax.xlane.f32.xlu0 %v15_v3  ;;  %38 = vperm.xlu1 %96, %v23_v2   ;;  %v18_v5 = vsel %vm14_vm0, %v13_v1, -inf  ;;  %v24_v6 = vld [vmem:[%s178_s1 + $0x8] sm:$0xff]  ;;  %v25_v12 = vlaneseq  ;;  %vm53_vm3 = vcmp.ge.s32.totalorder %v23_v2, 0  ;;  %vm63_vm5 = vcmask 7168  }
   0x4   :  { %vm54_vm4 = vcmp.ge.s32.totalorder %v24_v6, 0  ;;  %s131_s0 = smov [#allocation2]  }
   0x5   :  { %v26_v15 = vand.u32 127, %v25_v12  ;;  %s84_s1 = sshll.u32 %s131_s0, 4  ;;  %s85_s1 = int_to_ptr.vmem [resolvable:$true] %s84_s1 }
   0x6   :  { %s106_s18 = scalar_lea.vmem %s85_s1, 128  ;;  %p111_p1 = scmp.lt.s32.totalorder %s85_s1, %s85_s1 }
   0x7   :  { %19 = vmax.xlane.f32.xlu0 %v18_v5  ;;  %41 = vperm.xlu1 %96, %v24_v6   ;;  %p107_p0 = scmp.ne.s32.totalorder %s85_s1, %s106_s18  ;;  %p112_p2 = scmp.lt.s32.totalorder %s106_s18, %s106_s18 }
   0x9   :  { %p113_p3 = por %p112_p2, %p111_p1 }
   0xb   :  { %p114_p4 = pnand %p113_p3, %p107_p0 }
  0x82   :  { %v39_v14 = vpop.permute.xlu1 %38 }
  0x83   :  { %vm43_vm1 = vcmp.eq.s32.totalorder %v26_v15, %v39_v14 }
  0x86   :  { %v42_v17 = vpop.permute.xlu1 %41 }
  0x87   :  { %vm44_vm2 = vcmp.eq.s32.totalorder %v26_v15, %v42_v17 }
  0x90   :  { %v17_v7 = vpop.xlane.xlu0 %16 }
  0x91   :  { %v21_v8 = vsub.f32 %v12_v0, %v17_v7 }
  0x93   :  { %v27_v9 = vmul.f32 1.442695, %v21_v8  ;;  %v45_v19 = vsel %vm43_vm1, %v21_v8, 0.0 }
  0x94   :  { %v20_v10 = vpop.xlane.xlu0 %19  ;;  %v47_v21 = vsel %vm14_vm0, %v45_v19, 0.0 }
  0x95   :  { %98 = vpow2.f32 %v27_v9  ;;  %v22_v11 = vsub.f32 %v13_v1, %v20_v10 }
  0x97   :  { %v29_v13 = vmul.f32 1.442695, %v22_v11  ;;  %v46_v23 = vsel %vm44_vm2, %v22_v11, 0.0 }
  0x98   :  { %v50_v24 = vsel %vm14_vm0, %v46_v23, 0.0 }
  0x99   :  { %100 = vpow2.f32 %v29_v13 }
  0x9f   :  { %v99_v16 = vpop.eup %98 }
  0xa0   :  { %v31_v18 = vsel %vm14_vm0, %v99_v16, 0.0 }
  0xa1   :  { %32 = vadd.xlane.f32.xlu0 %v31_v18 }
  0xa3   :  { %v101_v20 = vpop.eup %100 }
  0xa4   :  { %v34_v22 = vsel %vm14_vm0, %v101_v20, 0.0 }
  0xa5   :  { %48 = vadd.xlane.f32.xlu0 %v47_v21  ;;  %35 = vadd.xlane.f32.xlu1 %v34_v22 }
  0xa9   :  { %51 = vadd.xlane.f32.xlu0 %v50_v24 }
 0x12e   :  { %v33_v25 = vpop.xlane.xlu0 %32 }
 0x12f   :  { %102 = vlog2.f32 %v33_v25 }
 0x132   :  { %v36_v26 = vpop.xlane.xlu1 %35  ;;  %v49_v28 = vpop.xlane.xlu0 %48 }
 0x133   :  { %104 = vlog2.f32 %v36_v26 }
 0x136   :  { %v52_v33 = vpop.xlane.xlu0 %51 }
 0x139   :  { %v103_v27 = vpop.eup %102 }
 0x13a   :  { %v56_v29 = vmul.f32 0.6931472, %v103_v27 }
 0x13c   :  { %v59_v30 = vsub.f32 %v56_v29, %v49_v28 }
 0x13d   :  { %v105_v31 = vpop.eup %104 }
 0x13e   :  { %v58_v32 = vmul.f32 0.6931472, %v105_v31  ;;  %v61_v34 = vsel %vm53_vm3, %v59_v30, 0.0 }
 0x13f   :  { %v64_v37 = vsel %vm63_vm5, %v61_v34, 0.0 }
 0x140   :  { %v60_v35 = vsub.f32 %v58_v32, %v52_v33 }
 0x142   :  { %v62_v36 = vsel %vm54_vm4, %v60_v35, 0.0 }
 0x143   :  { %v65_v38 = vsel %vm63_vm5, %v62_v36, 0.0 }
 0x144   :  { %v66_v39 = vadd.f32 %v65_v38, %v64_v37 }
 0x146   :  { %67 = vadd.xlane.f32.xlu0 %v66_v39 }
 0x1d3   :  { %v68_v40 = vpop.xlane.xlu0 %67 }
 0x1d4   :  { %v69_v41 = vrot.slane %v68_v40, 4 }
 0x1d6   :  { %v70_v42 = vadd.f32 %v69_v41, %v68_v40 }
 0x1d8   :  { %v71_v43 = vrot.slane %v70_v42, 2 }
 0x1da   :  { %v72_v44 = vadd.f32 %v71_v43, %v70_v42 }
 0x1dc   :  { %v73_v45 = vrot.slane %v72_v44, 1 }
 0x1de   :  { %v74_v46 = vadd.f32 %v73_v45, %v72_v44 }
 0x1e0   :  { %92 = vpush %v74_v46 }
 0x211   :  { %s93_s17 = spop %92 }
 0x212   :  { %v76_v47 = vstv %s93_s17 }
 0x213   :  { %77 = vst [vmem:[#allocation2] sm:$0xff] %v76_v47 }
 0x214   :  { %117 = shalt.err (!%p114_p4)
}
 0x215   :  { %s118_s21 = scalar_lea.hbm %s179_s2, 128 }
 0x216   :  { %p119_p5 = scmp.ne.s32.totalorder %s179_s2, %s118_s21  ;;  %p122_p6 = scmp.lt.u32.totalorder %s118_s21, %s179_s2 }
 0x218   :  { %p124_p7 = pnand %p122_p6, %p119_p5 }
 0x21a   :  { %127 = shalt.err (!%p124_p7)
}
 0x21b   :  { %87 = dma.vmem_to_hbm [thread:$0]  %s85_s1, 128, %s179_s2, [#allocation3]  }
 0x21c   :  { %128 = dma.done.wait [#allocation3], 128  }
 0x21d   :  { %129 = vsyncadd [#allocation3], 4294967168 }
 0x21e   :  { %91 = vsyncpa [#allocation3], 1 }

</bundles_post_ra>
